<compile_context>
chip_gen: v7x
topology: tpu7x:2x2x1
jax: 0.10.0
libtpu: 0.0.40
codegen_flags: <defaults>
</compile_context>

<pallas_src>
import jax
import jax.numpy as jnp
import numpy as np
from jax.experimental import pallas as pl
from jax.experimental.pallas import tpu as pltpu


def _build_shift_mean_weight(T, C):
    """W3 (T, C, C) such that  out[b] = sum_j x[b, j, :] @ W3[j]  reproduces
    mean_t( shift_conv(x.view(C, T)).permute(0, 2, 1) + x )[b].

    With x_flat[b, k] = x[b, k // C, k % C] (torch .view is a memory
    reinterpretation, not a transpose), the conv output row c sums to the
    telescoped strip  sum_j x_flat[b, c*T + j]  minus one boundary element for
    the first / last channel quarter; the residual + mean adds 1/T of every
    x[b, j, c].  Both parts are encoded below as a (T*C, C) matrix of
    {0, 1/T, 2/T} entries, reshaped to (T, C, C).
    """
    W = np.zeros((T * C, C), dtype=np.float32)
    inv_t = np.float32(1.0 / T)
    c = np.arange(C)
    q = C // 4
    for j in range(T):
        # residual (+ x_original) part: x[b, j, c] contributes 1/T to out[b, c]
        W[j * C + c, c] += inv_t
        # conv part: x_flat[b, c*T + j] contributes 1/T to out[b, c], except:
        #   first quarter  (tap j-1): the j == T-1 strip element never appears
        #   last  quarter  (tap j+1): the j == 0   strip element never appears
        valid = np.ones(C, dtype=bool)
        if j == T - 1:
            valid[:q] = False
        if j == 0:
            valid[q + C // 2:] = False
        cc = c[valid]
        W[cc * T + j, cc] += inv_t
    return W.reshape(T, C, C)


def _conv1d_shift_mean_kernel(x_ref, w_ref, o_ref):
    # x_ref: (Bt, T, C) input tile (original dtype)
    # w_ref: (T, C, C)  constant shift+mean weight, resident across grid steps
    # o_ref: (Bt, C)    lane-dense output slab
    T = x_ref.shape[1]
    acc = jnp.zeros(o_ref.shape, jnp.float32)
    for j in range(T):                       # static unroll; T (num frames) is small
        xj = x_ref[:, j, :].astype(jnp.float32)              # (Bt, C)
        acc = acc + jnp.dot(xj, w_ref[j],
                            preferred_element_type=jnp.float32,
                            precision=jax.lax.Precision.HIGHEST)
    o_ref[...] = acc.astype(o_ref.dtype)


def _meanp_kernel(x_ref, o_ref):
    # x_ref: (Bt, T, C)  ->  o_ref: (Bt, C)   (plain mean over t)
    T = x_ref.shape[1]
    acc = x_ref[:, 0, :].astype(jnp.float32)
    for j in range(1, T):                    # static unroll
        acc = acc + x_ref[:, j, :].astype(jnp.float32)
    o_ref[...] = (acc * (1.0 / T)).astype(o_ref.dtype)


def _pick_bt(B, T, C, itemsize, target_bytes=2 << 20):
    """Batch rows per grid step: ~2 MB input blocks, multiple of 8 (or full B)."""
    bt = max(1, target_bytes // (T * C * itemsize))
    if bt >= B:
        return B
    bt = max(8, (bt // 8) * 8)
    return min(bt, B)


def visual_prompt_forward(x, sim_header="Conv_1D"):
    """Pallas equivalent of VisualPrompt.forward ('meanP' / 'Conv_1D' heads).

    x: (B, T, C); returns (B, C) in x.dtype (matches x.mean(dim=1) semantics).
    """
    B, T, C = x.shape
    itemsize = jnp.dtype(x.dtype).itemsize
    bt = _pick_bt(B, T, C, itemsize)
    grid = (pl.cdiv(B, bt),)
    out_shape = jax.ShapeDtypeStruct((B, C), x.dtype)
    x_spec = pl.BlockSpec((bt, T, C), lambda b: (b, 0, 0))
    out_spec = pl.BlockSpec((bt, C), lambda b: (b, 0))

    if sim_header == "meanP":
        vmem_limit = min(64 << 20,
                         max(32 << 20, 4 * bt * T * C * itemsize + (4 << 20)))
        return pl.pallas_call(
            _meanp_kernel,
            out_shape=out_shape,
            grid=grid,
            in_specs=[x_spec],
            out_specs=out_spec,
            compiler_params=pltpu.CompilerParams(
                dimension_semantics=("parallel",),
                vmem_limit_bytes=vmem_limit),
        )(x)

    if sim_header == "Conv_1D":
        assert C % 4 == 0, "embed_dim must be divisible by 4 (as in the module)"
        w3 = jnp.asarray(_build_shift_mean_weight(T, C))     # (T, C, C) f32, built once
        w_spec = pl.BlockSpec((T, C, C), lambda b: (0, 0, 0))  # constant -> stays resident
        vmem_limit = min(
            64 << 20,
            max(32 << 20,
                2 * bt * T * C * itemsize     # double-buffered x blocks
                + 2 * T * C * C * 4           # resident W3 (+buffer)
                + 2 * bt * C * itemsize       # output blocks
                + (4 << 20)))                 # headroom
        return pl.pallas_call(
            _conv1d_shift_mean_kernel,
            out_shape=out_shape,
            grid=grid,
            in_specs=[x_spec, w_spec],
            out_specs=out_spec,
            compiler_params=pltpu.CompilerParams(
                dimension_semantics=("parallel",),
                vmem_limit_bytes=vmem_limit),
        )(x, w3)

    # TODO(synk): 'Transf', 'LSTM', 'Transf_cls' heads need TemporalTransformer /
    # nn.LSTM / TAggregate, which are not defined in the reference file.
    raise ValueError(f"Unsupported sim_header for Pallas port: {sim_header}")


def _reference_conv1d(x):
    """Pure-JAX reference mirroring the PyTorch Conv_1D path bit-for-bit."""
    B, T, C = x.shape
    xv = x.reshape(B, C, T)                                   # torch .view
    q = C // 4
    left = jnp.pad(xv, ((0, 0), (0, 0), (1, 0)))[:, :, :T]    # xv[:, :, j-1]
    right = jnp.pad(xv, ((0, 0), (0, 0), (0, 1)))[:, :, 1:]   # xv[:, :, j+1]
    chan = jnp.arange(C)[None, :, None]
    conv = jnp.where(chan < q, left, jnp.where(chan < q + C // 2, xv, right))
    y = jnp.transpose(conv, (0, 2, 1))                        # permute(0, 2, 1)
    return (y + x).mean(axis=1)                               # mean over t


if __name__ == "__main__":
    B, T, C = 2, 8, 32   # (batch, frames T, embed_dim)
    key = jax.random.PRNGKey(0)
    x = jax.random.normal(key, (B, T, C), dtype=jnp.float32)

    out = jax.block_until_ready(visual_prompt_forward(x, sim_header="Conv_1D"))
    ref = _reference_conv1d(x)
    assert out.shape == (B, C)
    assert out.dtype == x.dtype
    assert jnp.allclose(out, ref, rtol=1e-5, atol=1e-5), "Conv_1D mismatch vs reference"

    out_mp = jax.block_until_ready(visual_prompt_forward(x, sim_header="meanP"))
    assert jnp.allclose(out_mp, x.mean(axis=1), rtol=1e-5, atol=1e-5), "meanP mismatch"

    print("KERNEL_OK")
</pallas_src>

<mosaic_0001>
module attributes {stable_mosaic.version = 11 : i64} {
  func.func @_conv1d_shift_mean_kernel(%arg0: i32, %arg1: memref<2x8x32xf32, #tpu.memory_space<vmem>>, %arg2: memref<8x32x32xf32, #tpu.memory_space<vmem>>, %arg3: memref<2x32xf32, #tpu.memory_space<vmem>>) attributes {dimension_semantics = [#tpu.dimension_semantics<parallel>], iteration_bounds = array<i64: 1>, scalar_prefetch = 0 : i64, scratch_operands = 0 : i64, tpu.core_type = #tpu.core_type<tc>, window_params = [{transform_indices = @transform_0, window_bounds = array<i64: 2, 8, 32>}, {pipeline_mode = #tpu.pipeline_mode<synchronous>, transform_indices = @transform_1, window_bounds = array<i64: 8, 32, 32>}, {transform_indices = @transform_2, window_bounds = array<i64: 2, 32>}]} {
    %cst = arith.constant 0.000000e+00 : f32
    %0 = vector.broadcast %cst : f32 to vector<2x32xf32>
    %c0 = arith.constant 0 : index
    %c0_0 = arith.constant 0 : index
    %c0_1 = arith.constant 0 : index
    %1 = vector.load %arg1[%c0, %c0_0, %c0_1] : memref<2x8x32xf32, #tpu.memory_space<vmem>>, vector<2x1x32xf32>
    %2 = vector.shape_cast %1 : vector<2x1x32xf32> to vector<2x32xf32>
    %c0_2 = arith.constant 0 : index
    %c0_3 = arith.constant 0 : index
    %c0_4 = arith.constant 0 : index
    %3 = vector.load %arg2[%c0_2, %c0_3, %c0_4] : memref<8x32x32xf32, #tpu.memory_space<vmem>>, vector<1x32x32xf32>
    %4 = vector.shape_cast %3 : vector<1x32x32xf32> to vector<32x32xf32>
    %cst_5 = arith.constant dense<0.000000e+00> : vector<2x32xf32>
    %5 = tpu.matmul %2, %4, %cst_5 {dimension_numbers = #tpu.dot_dimension_numbers<[1], [0], [0], [1], [0, 0, 1, 1], [], []>, precision = #tpu.contract_precision<fp32>} : vector<2x32xf32>, vector<32x32xf32>, vector<2x32xf32> -> vector<2x32xf32>
    %6 = arith.addf %0, %5 : vector<2x32xf32>
    %c0_6 = arith.constant 0 : index
    %c1 = arith.constant 1 : index
    %c0_7 = arith.constant 0 : index
    %7 = vector.load %arg1[%c0_6, %c1, %c0_7] : memref<2x8x32xf32, #tpu.memory_space<vmem>>, vector<2x1x32xf32>
    %8 = vector.shape_cast %7 : vector<2x1x32xf32> to vector<2x32xf32>
    %c1_8 = arith.constant 1 : index
    %c0_9 = arith.constant 0 : index
    %c0_10 = arith.constant 0 : index
    %9 = vector.load %arg2[%c1_8, %c0_9, %c0_10] : memref<8x32x32xf32, #tpu.memory_space<vmem>>, vector<1x32x32xf32>
    %10 = vector.shape_cast %9 : vector<1x32x32xf32> to vector<32x32xf32>
    %cst_11 = arith.constant dense<0.000000e+00> : vector<2x32xf32>
    %11 = tpu.matmul %8, %10, %cst_11 {dimension_numbers = #tpu.dot_dimension_numbers<[1], [0], [0], [1], [0, 0, 1, 1], [], []>, precision = #tpu.contract_precision<fp32>} : vector<2x32xf32>, vector<32x32xf32>, vector<2x32xf32> -> vector<2x32xf32>
    %12 = arith.addf %6, %11 : vector<2x32xf32>
    %c0_12 = arith.constant 0 : index
    %c2 = arith.constant 2 : index
    %c0_13 = arith.constant 0 : index
    %13 = vector.load %arg1[%c0_12, %c2, %c0_13] : memref<2x8x32xf32, #tpu.memory_space<vmem>>, vector<2x1x32xf32>
    %14 = vector.shape_cast %13 : vector<2x1x32xf32> to vector<2x32xf32>
    %c2_14 = arith.constant 2 : index
    %c0_15 = arith.constant 0 : index
    %c0_16 = arith.constant 0 : index
    %15 = vector.load %arg2[%c2_14, %c0_15, %c0_16] : memref<8x32x32xf32, #tpu.memory_space<vmem>>, vector<1x32x32xf32>
    %16 = vector.shape_cast %15 : vector<1x32x32xf32> to vector<32x32xf32>
    %cst_17 = arith.constant dense<0.000000e+00> : vector<2x32xf32>
    %17 = tpu.matmul %14, %16, %cst_17 {dimension_numbers = #tpu.dot_dimension_numbers<[1], [0], [0], [1], [0, 0, 1, 1], [], []>, precision = #tpu.contract_precision<fp32>} : vector<2x32xf32>, vector<32x32xf32>, vector<2x32xf32> -> vector<2x32xf32>
    %18 = arith.addf %12, %17 : vector<2x32xf32>
    %c0_18 = arith.constant 0 : index
    %c3 = arith.constant 3 : index
    %c0_19 = arith.constant 0 : index
    %19 = vector.load %arg1[%c0_18, %c3, %c0_19] : memref<2x8x32xf32, #tpu.memory_space<vmem>>, vector<2x1x32xf32>
    %20 = vector.shape_cast %19 : vector<2x1x32xf32> to vector<2x32xf32>
    %c3_20 = arith.constant 3 : index
    %c0_21 = arith.constant 0 : index
    %c0_22 = arith.constant 0 : index
    %21 = vector.load %arg2[%c3_20, %c0_21, %c0_22] : memref<8x32x32xf32, #tpu.memory_space<vmem>>, vector<1x32x32xf32>
    %22 = vector.shape_cast %21 : vector<1x32x32xf32> to vector<32x32xf32>
    %cst_23 = arith.constant dense<0.000000e+00> : vector<2x32xf32>
    %23 = tpu.matmul %20, %22, %cst_23 {dimension_numbers = #tpu.dot_dimension_numbers<[1], [0], [0], [1], [0, 0, 1, 1], [], []>, precision = #tpu.contract_precision<fp32>} : vector<2x32xf32>, vector<32x32xf32>, vector<2x32xf32> -> vector<2x32xf32>
    %24 = arith.addf %18, %23 : vector<2x32xf32>
    %c0_24 = arith.constant 0 : index
    %c4 = arith.constant 4 : index
    %c0_25 = arith.constant 0 : index
    %25 = vector.load %arg1[%c0_24, %c4, %c0_25] : memref<2x8x32xf32, #tpu.memory_space<vmem>>, vector<2x1x32xf32>
    %26 = vector.shape_cast %25 : vector<2x1x32xf32> to vector<2x32xf32>
    %c4_26 = arith.constant 4 : index
    %c0_27 = arith.constant 0 : index
    %c0_28 = arith.constant 0 : index
    %27 = vector.load %arg2[%c4_26, %c0_27, %c0_28] : memref<8x32x32xf32, #tpu.memory_space<vmem>>, vector<1x32x32xf32>
    %28 = vector.shape_cast %27 : vector<1x32x32xf32> to vector<32x32xf32>
    %cst_29 = arith.constant dense<0.000000e+00> : vector<2x32xf32>
    %29 = tpu.matmul %26, %28, %cst_29 {dimension_numbers = #tpu.dot_dimension_numbers<[1], [0], [0], [1], [0, 0, 1, 1], [], []>, precision = #tpu.contract_precision<fp32>} : vector<2x32xf32>, vector<32x32xf32>, vector<2x32xf32> -> vector<2x32xf32>
    %30 = arith.addf %24, %29 : vector<2x32xf32>
    %c0_30 = arith.constant 0 : index
    %c5 = arith.constant 5 : index
    %c0_31 = arith.constant 0 : index
    %31 = vector.load %arg1[%c0_30, %c5, %c0_31] : memref<2x8x32xf32, #tpu.memory_space<vmem>>, vector<2x1x32xf32>
    %32 = vector.shape_cast %31 : vector<2x1x32xf32> to vector<2x32xf32>
    %c5_32 = arith.constant 5 : index
    %c0_33 = arith.constant 0 : index
    %c0_34 = arith.constant 0 : index
    %33 = vector.load %arg2[%c5_32, %c0_33, %c0_34] : memref<8x32x32xf32, #tpu.memory_space<vmem>>, vector<1x32x32xf32>
    %34 = vector.shape_cast %33 : vector<1x32x32xf32> to vector<32x32xf32>
    %cst_35 = arith.constant dense<0.000000e+00> : vector<2x32xf32>
    %35 = tpu.matmul %32, %34, %cst_35 {dimension_numbers = #tpu.dot_dimension_numbers<[1], [0], [0], [1], [0, 0, 1, 1], [], []>, precision = #tpu.contract_precision<fp32>} : vector<2x32xf32>, vector<32x32xf32>, vector<2x32xf32> -> vector<2x32xf32>
    %36 = arith.addf %30, %35 : vector<2x32xf32>
    %c0_36 = arith.constant 0 : index
    %c6 = arith.constant 6 : index
    %c0_37 = arith.constant 0 : index
    %37 = vector.load %arg1[%c0_36, %c6, %c0_37] : memref<2x8x32xf32, #tpu.memory_space<vmem>>, vector<2x1x32xf32>
    %38 = vector.shape_cast %37 : vector<2x1x32xf32> to vector<2x32xf32>
    %c6_38 = arith.constant 6 : index
    %c0_39 = arith.constant 0 : index
    %c0_40 = arith.constant 0 : index
    %39 = vector.load %arg2[%c6_38, %c0_39, %c0_40] : memref<8x32x32xf32, #tpu.memory_space<vmem>>, vector<1x32x32xf32>
    %40 = vector.shape_cast %39 : vector<1x32x32xf32> to vector<32x32xf32>
    %cst_41 = arith.constant dense<0.000000e+00> : vector<2x32xf32>
    %41 = tpu.matmul %38, %40, %cst_41 {dimension_numbers = #tpu.dot_dimension_numbers<[1], [0], [0], [1], [0, 0, 1, 1], [], []>, precision = #tpu.contract_precision<fp32>} : vector<2x32xf32>, vector<32x32xf32>, vector<2x32xf32> -> vector<2x32xf32>
    %42 = arith.addf %36, %41 : vector<2x32xf32>
    %c0_42 = arith.constant 0 : index
    %c7 = arith.constant 7 : index
    %c0_43 = arith.constant 0 : index
    %43 = vector.load %arg1[%c0_42, %c7, %c0_43] : memref<2x8x32xf32, #tpu.memory_space<vmem>>, vector<2x1x32xf32>
    %44 = vector.shape_cast %43 : vector<2x1x32xf32> to vector<2x32xf32>
    %c7_44 = arith.constant 7 : index
    %c0_45 = arith.constant 0 : index
    %c0_46 = arith.constant 0 : index
    %45 = vector.load %arg2[%c7_44, %c0_45, %c0_46] : memref<8x32x32xf32, #tpu.memory_space<vmem>>, vector<1x32x32xf32>
    %46 = vector.shape_cast %45 : vector<1x32x32xf32> to vector<32x32xf32>
    %cst_47 = arith.constant dense<0.000000e+00> : vector<2x32xf32>
    %47 = tpu.matmul %44, %46, %cst_47 {dimension_numbers = #tpu.dot_dimension_numbers<[1], [0], [0], [1], [0, 0, 1, 1], [], []>, precision = #tpu.contract_precision<fp32>} : vector<2x32xf32>, vector<32x32xf32>, vector<2x32xf32> -> vector<2x32xf32>
    %48 = arith.addf %42, %47 : vector<2x32xf32>
    %c0_48 = arith.constant 0 : index
    %c0_49 = arith.constant 0 : index
    %49 = vector.load %arg3[%c0_48, %c0_49] : memref<2x32xf32, #tpu.memory_space<vmem>>, vector<2x32xf32>
    tpu.vector_store %arg3[%c0_48, %c0_49], %48 {strides = array<i32>} : memref<2x32xf32, #tpu.memory_space<vmem>>, vector<2x32xf32>,
    return
  }
  func.func @transform_0(%arg0: i32) -> (i32, i32, i32) {
    %c0_i32 = arith.constant 0 : i32
    %c0_i32_0 = arith.constant 0 : i32
    %c0_i32_1 = arith.constant 0 : i32
    return %arg0, %c0_i32, %c0_i32_0 : i32, i32, i32
  }
  func.func @transform_1(%arg0: i32) -> (i32, i32, i32) {
    %c0_i32 = arith.constant 0 : i32
    %c0_i32_0 = arith.constant 0 : i32
    %c0_i32_1 = arith.constant 0 : i32
    %c0_i32_2 = arith.constant 0 : i32
    return %c0_i32, %c0_i32_0, %c0_i32_1 : i32, i32, i32
  }
  func.func @transform_2(%arg0: i32) -> (i32, i32) {
    %c0_i32 = arith.constant 0 : i32
    %c0_i32_0 = arith.constant 0 : i32
    return %arg0, %c0_i32 : i32, i32
  }
}

</mosaic_0001>

<bundles_post_ra>
// kernel: tpu_custom_call.1
= control target key start
LH: loop header
LB: loop body
LE: loop exit
PB: predicated region body
PF: predicated region fallthrough
CT: control target
= control target key end

     0   :  { %7 = vsyncpa [#allocation3], 0  ;;  %s6069_s0 = inlined_call_operand.hbm [shape: f32[2,8,32], index: 0, kind: input, shape index: {}]   ;;  %s6070_s1 = inlined_call_operand.hbm [shape: f32[8,32,32], index: 1, kind: input, shape index: {}]   ;;  %s6071_s2 = inlined_call_operand.hbm [shape: f32[2,32], index: 2, kind: output, shape index: {}]  }
   0x1   :  { %8 = vsyncpa [#allocation6], 0 }
   0x2   :  { %9 = vsyncpa [#allocation4], 0  ;;  %s5278_s9 = smov [#allocation2]   ;;  %s5206_s13 = scalar_lea.hbm %s6069_s0, 256 }
   0x3   :  { %s15_s10 = sshll.u32 %s5278_s9, 4  ;;  %p5207_p0 = scmp.ne.s32.totalorder %s6069_s0, %s5206_s13  ;;  %s16_s10 = int_to_ptr.vmem [resolvable:$true] %s15_s10 }
   0x4   :  { %p5210_p1 = scmp.lt.u32.totalorder %s5206_s13, %s6069_s0 }
   0x6   :  { %p5212_p2 = pnand %p5210_p1, %p5207_p0 }
   0x8   :  { %5215 = shalt.err (!%p5212_p2)
}
   0x9   :  { %s5216_s18 = scalar_lea.vmem %s16_s10, 256  ;;  %p5221_p4 = scmp.lt.s32.totalorder %s16_s10, %s16_s10 }
   0xa   :  { %p5217_p3 = scmp.ne.s32.totalorder %s16_s10, %s5216_s18  ;;  %p5222_p5 = scmp.lt.s32.totalorder %s5216_s18, %s5216_s18 }
   0xc   :  { %p5223_p6 = por %p5222_p5, %p5221_p4 }
   0xe   :  { %p5224_p7 = pnand %p5223_p6, %p5217_p3 }
  0x10   :  { %5227 = shalt.err (!%p5224_p7)
}
  0x11   :  { %s5279_s19 = smov 128   ;;  %s5280_s20 = smov 8  }
  0x12   :  { %21 = dma.hbm_to_vmem [thread:$0]  %s6069_s0, 256, %s16_s10, [#allocation3], %s5279_s19, %s5279_s19, %s5280_s20  }
  0x13   :  { %s5281_s23 = smov [#allocation5]   ;;  %s5228_s27 = scalar_lea.hbm %s6070_s1, 4096 }
  0x14   :  { %s27_s24 = sshll.u32 %s5281_s23, 4  ;;  %p5229_p8 = scmp.ne.s32.totalorder %s6070_s1, %s5228_s27  ;;  %s28_s24 = int_to_ptr.vmem [resolvable:$true] %s27_s24 }
  0x15   :  { %p5232_p9 = scmp.lt.u32.totalorder %s5228_s27, %s6070_s1 }
  0x17   :  { %p5234_p10 = pnand %p5232_p9, %p5229_p8 }
  0x19   :  { %5237 = shalt.err (!%p5234_p10)
}
  0x1a   :  { %s5238_s4 = scalar_lea.vmem %s28_s24, 4096  ;;  %p5243_p12 = scmp.lt.s32.totalorder %s28_s24, %s28_s24 }
  0x1b   :  { %p5239_p11 = scmp.ne.s32.totalorder %s28_s24, %s5238_s4  ;;  %p5244_p13 = scmp.lt.s32.totalorder %s5238_s4, %s5238_s4 }
  0x1d   :  { %p5245_p0 = por %p5244_p13, %p5243_p12 }
  0x1f   :  { %p5246_p1 = pnand %p5245_p0, %p5239_p11 }
  0x21   :  { %5249 = shalt.err (!%p5246_p1)
}
  0x22   :  { %33 = dma.hbm_to_vmem [thread:$0]  %s6070_s1, 4096, %s28_s24, [#allocation6], %s5279_s19, %s5279_s19, %s5280_s20  }
  0x23   :  { %5272 = dma.done.wait [#allocation3], 256  }
  0x24   :  { %5273 = vsyncadd [#allocation3], 4294967040 }
  0x25   :  { %5274 = dma.done.wait [#allocation6], 4096  }
  0x26   :  { %5275 = vsyncadd [#allocation6], 4294963200  ;;  %v5282_v0 = vmov 0.0|0.0   ;;  %vm5283_vm0 = vmmov 0   ;;  %v5284_v1 = vmov 0.0   ;;  %v49_v2 = vld [vmem:[#allocation5 + $0x20] sm:$0xff] }
  0x27   :  { %4817 = vmatprep.subr.bf16.mxu1 %v5282_v0  ;;  %4961 = vmatprep.subr.bf16.mxu0 %v5282_v0  ;;  %v50_v3 = vld [vmem:[#allocation5 + $0x28] sm:$0xff]  ;;  %v2038_v4 = vld [vmem:[#allocation5 + $0x80] sm:$0xff]  ;;  %vm56_vm1 = vcmask 1041409   ;;  %v62_v5 = vand.u32 4294901760, %v49_v2  ;;  %v51_v9 = vld [vmem:[#allocation5 + $0x30] sm:$0xff]  ;;  %vm58_vm2 = vcmask 261120  }
  0x28   :  { %4297 = vmatprep.mubr.msk.f32.mxu1 %vm5283_vm0, %v5284_v1  ;;  %4561 = vmatprep.mubr.msk.f32.mxu0 %vm5283_vm0, %v5284_v1  ;;  %v65_v6 = vand.u32 4294901760, %v50_v3  ;;  %v2039_v7 = vld [vmem:[#allocation5 + $0x88] sm:$0xff]  ;;  %v2049_v8 = vand.u32 4294901760, %v2038_v4  ;;  %v52_v10 = vld [vmem:[#allocation5 + $0x38] sm:$0xff]  ;;  %v68_v12 = vand.u32 4294901760, %v51_v9  ;;  %v2040_v14 = vld [vmem:[#allocation5 + $0x90] sm:$0xff] }
  0x29   :  { %v2052_v11 = vand.u32 4294901760, %v2039_v7  ;;  %v71_v13 = vand.u32 4294901760, %v52_v10  ;;  %v2041_v15 = vld [vmem:[#allocation5 + $0x98] sm:$0xff]  ;;  %v5333_v17 = vsub.f32 %v49_v2, %v62_v5  ;;  %v46_v25 = vld [vmem:[#allocation2 + $0x1] sm:$0x1]  ;;  %v2055_v28 = vand.u32 4294901760, %v2040_v14 }
  0x2a   :  { %v5331_v16 = vpack.c.bf16 %v65_v6, %v62_v5  ;;  %v5335_v18 = vsub.f32 %v50_v3, %v65_v6  ;;  %v5337_v19 = vsub.f32 %v2038_v4, %v2049_v8  ;;  %v47_v20 = vld [vmem:[#allocation2 + $0x9] sm:$0x1]  ;;  %v5345_v24 = vsub.f32 %v51_v9, %v68_v12  ;;  %v2036_v26 = vld [vmem:[#allocation2 + $0xc] sm:$0x1]  ;;  %v2035_v31 = vld [vmem:[#allocation2 + $0x4] sm:$0x1] }
  0x2b   :  { %v5339_v21 = vpack.c.bf16 %v2052_v11, %v2049_v8  ;;  %v5341_v22 = vsub.f32 %v2039_v7, %v2052_v11  ;;  %v5343_v23 = vpack.c.bf16 %v71_v13, %v68_v12  ;;  %v5348_v27 = vsub.f32 %v52_v10, %v71_v13  ;;  %s5285_s1 = smov [#allocation7]  }
  0x2c   :  { %4819 = vmatpush3.bf16.msra.mxu1 %v5331_v16  ;;  %v2058_v29 = vand.u32 4294901760, %v2041_v15  ;;  %v55_v30 = vrot.slane %v47_v20, 7  ;;  %v143_v32 = vand.u32 4294901760, %v5333_v17  ;;  %v150_v33 = vand.u32 4294901760, %v5335_v18  ;;  %s4039_s6 = sshll.u32 %s5285_s1, 4  ;;  %s4040_s6 = int_to_ptr.vmem [resolvable:$true] %s4039_s6 }
  0x2d   :  { %4963 = vmatpush3.bf16.msra.mxu0 %v5339_v21  ;;  %4820 = vmatprep.subr.bf16.mxu1 %v5282_v0  ;;  %v2044_v34 = vrot.slane %v2036_v26, 7  ;;  %v2130_v35 = vand.u32 4294901760, %v5337_v19  ;;  %v5358_v37 = vsub.f32 %v2040_v14, %v2055_v28  ;;  %v2137_v47 = vand.u32 4294901760, %v5341_v22  ;;  %s5250_s7 = scalar_lea.vmem %s4040_s6, 32  ;;  %p5255_p3 = scmp.lt.s32.totalorder %s4040_s6, %s4040_s6 }
  0x2e   :  { %4964 = vmatprep.subr.bf16.mxu0 %v5282_v0  ;;  %v5356_v36 = vpack.c.bf16 %v2058_v29, %v2055_v28  ;;  %v5360_v38 = vsub.f32 %v2041_v15, %v2058_v29  ;;  %v57_v39 = vsel %vm56_vm1, %v55_v30, %v46_v25  ;;  %v144_v41 = vsub.f32 %v5333_v17, %v143_v32  ;;  %v41_v29 = vld [vmem:[#allocation2 + $0x8] sm:$0x1]  ;;  %v2535_v30 = vld [vmem:[#allocation2 + $0xd] sm:$0x1]  ;;  %p5251_p2 = scmp.ne.s32.totalorder %s4040_s6, %s5250_s7  ;;  %p5256_p4 = scmp.lt.s32.totalorder %s5250_s7, %s5250_s7 }
  0x2f   :  { %v59_v40 = vsel %vm58_vm2, %v57_v39, 0  ;;  %v151_v42 = vsub.f32 %v5335_v18, %v150_v33  ;;  %v2045_v43 = vsel %vm56_vm1, %v2044_v34, %v2035_v31  ;;  %v2131_v46 = vsub.f32 %v5337_v19, %v2130_v35  ;;  %v40_v34 = vld [vmem:[#allocation2] sm:$0x1] }
  0x30   :  { %4822 = vmatpush3.bf16.msra.mxu1 %v5343_v23  ;;  %v5372_v44 = vand.u32 4294901760, %v59_v40  ;;  %v2046_v45 = vsel %vm58_vm2, %v2045_v43, 0  ;;  %v145_v48 = vand.u32 4294901760, %v144_v41  ;;  %v157_v50 = vand.u32 4294901760, %v5345_v24  ;;  %v1038_v41 = vld [vmem:[#allocation2 + $0xa] sm:$0x1]  ;;  %p5257_p5 = por %p5256_p4, %p5255_p3 }
  0x31   :  { %4966 = vmatpush3.bf16.msra.mxu0 %v5356_v36  ;;  %4823 = vmatprep.subr.bf16.mxu1 %v5282_v0  ;;  %v5381_v49 = vand.u32 4294901760, %v2046_v45  ;;  %v152_v52 = vand.u32 4294901760, %v151_v42  ;;  %v2138_v53 = vsub.f32 %v5341_v22, %v2137_v47  ;;  %v164_v54 = vand.u32 4294901760, %v5348_v27  ;;  %v3034_v42 = vld [vmem:[#allocation2 + $0xe] sm:$0x1] }
  0x32   :  { %4967 = vmatprep.subr.bf16.mxu0 %v5282_v0  ;;  %v5386_v51 = vsub.f32 %v59_v40, %v5372_v44  ;;  %v2132_v56 = vand.u32 4294901760, %v2131_v46  ;;  %v158_v57 = vsub.f32 %v5345_v24, %v157_v50  ;;  %v2144_v58 = vand.u32 4294901760, %v5358_v37  ;;  %v2534_v40 = vld [vmem:[#allocation2 + $0x5] sm:$0x1]  ;;  %v5460_v46 = vld [vmem:[#allocation5 + $0x8] sm:$0xff]  ;;  %p5258_p6 = pnand %p5257_p5, %p5251_p2 }
  0x33   :  { %v5393_v55 = vsub.f32 %v2046_v45, %v5381_v49  ;;  %v2139_v60 = vand.u32 4294901760, %v2138_v53  ;;  %v165_v61 = vsub.f32 %v5348_v27, %v164_v54  ;;  %v2151_v62 = vand.u32 4294901760, %v5360_v38  ;;  %v5458_v45 = vld [vmem:[#allocation5] sm:$0xff]  ;;  %v1037_v53 = vld [vmem:[#allocation2 + $0x2] sm:$0x1] }
  0x34   :  { %v132_v59 = vand.u32 4294901760, %v5386_v51  ;;  %v2145_v2 = vsub.f32 %v5358_v37, %v2144_v58  ;;  %v4824_v5 = vpack.c.bf16 %v152_v52, %v145_v48  ;;  %v159_v7 = vand.u32 4294901760, %v158_v57  ;;  %v5468_v52 = vld [vmem:[#allocation5 + $0xa0] sm:$0xff] }
  0x35   :  { %v2119_v63 = vand.u32 4294901760, %v5393_v55  ;;  %v2152_v4 = vsub.f32 %v5360_v38, %v2151_v62  ;;  %v166_v8 = vand.u32 4294901760, %v165_v61  ;;  %v4968_v10 = vpack.c.bf16 %v2139_v60, %v2132_v56  ;;  %v3033_v56 = vld [vmem:[#allocation2 + $0x6] sm:$0x1]  ;;  %v2540_v60 = vld [vmem:[#allocation5 + $0xb8] sm:$0xff] }
  0x36   :  { %v133_v3 = vsub.f32 %v5386_v51, %v132_v59  ;;  %v2146_v11 = vand.u32 4294901760, %v2145_v2  ;;  %v4830_v20 = vpack.c.bf16 %v5335_v18, %v5333_v17  ;;  %v4974_v25 = vpack.c.bf16 %v5341_v22, %v5337_v19  ;;  %v5472_v18 = vld [vmem:[#allocation5 + $0xa8] sm:$0xff] }
  0x37   :  { %v2120_v6 = vsub.f32 %v5393_v55, %v2119_v63  ;;  %v2153_v12 = vand.u32 4294901760, %v2152_v4  ;;  %v4827_v14 = vpack.c.bf16 %v166_v8, %v159_v7  ;;  %v4833_v26 = vpack.c.bf16 %v5348_v27, %v5345_v24 }
  0x38   :  { %v134_v9 = vand.u32 4294901760, %v133_v3  ;;  %v4977_v28 = vpack.c.bf16 %v5360_v38, %v5358_v37  ;;  %v548_v31 = vrot.slane %v41_v29, 7  ;;  %v2543_v39 = vrot.slane %v2535_v30, 7 }
  0x39   :  { %v2121_v13 = vand.u32 4294901760, %v2120_v6  ;;  %v4971_v15 = vpack.c.bf16 %v2153_v12, %v2146_v11  ;;  %v4842_v43 = vpack.c.bf16 %v150_v33, %v143_v32  ;;  %v4986_v48 = vpack.c.bf16 %v2137_v47, %v2130_v35 }
  0x3a   :  { %4298 = vmatmul.mubr.f32.vlgmr.msra.gmra.mrb[0].mxu1 %v134_v9  ;;  %v549_v17 = vsel %vm56_vm1, %v548_v31, %v40_v34  ;;  %v2544_v32 = vsel %vm56_vm1, %v2543_v39, %v2534_v40  ;;  %v1046_v33 = vrot.slane %v1038_v41, 7  ;;  %v3042_v57 = vrot.slane %v3034_v42, 7 }
  0x3b   :  { %4825 = vmatpush3.bf16.msra.mxu1 %v4824_v5  ;;  %4562 = vmatmul.mubr.f32.vlgmr.msra.gmra.mrb[0].mxu0 %v2121_v13  ;;  %v4845_v19 = vpack.c.bf16 %v164_v54, %v157_v50  ;;  %v553_v22 = vand.u32 4294901760, %v5458_v45  ;;  %v556_v35 = vand.u32 4294901760, %v5460_v46  ;;  %v4989_v47 = vpack.c.bf16 %v2151_v62, %v2144_v58  ;;  %v45_v54 = vld [vmem:[#allocation5 + $0x18] sm:$0xff]  ;;  %v2539_v58 = vld [vmem:[#allocation5 + $0xb0] sm:$0xff] }
  0x3c   :  { %4969 = vmatpush3.bf16.msra.mxu0 %v4968_v10  ;;  %4826 = vmatprep.subr.bf16.mxu1 %v5282_v0  ;;  %v550_v24 = vsel %vm58_vm2, %v549_v17, 0  ;;  %v1047_v27 = vsel %vm56_vm1, %v1046_v33, %v1037_v53  ;;  %v2551_v50 = vand.u32 4294901760, %v5472_v18  ;;  %v3043_v38 = vsel %vm56_vm1, %v3042_v57, %v3033_v56  ;;  %v3532_v57 = vld [vmem:[#allocation2 + $0x7] sm:$0x1] }
  0x3d   :  { %4970 = vmatprep.subr.bf16.mxu0 %v5282_v0  ;;  %4308 = vmatprep.mubr.msk.f32.mxu1 %vm5283_vm0, %v5284_v1  ;;  %v5498_v37 = vsel %vm58_vm2, %v1047_v27, 0  ;;  %v5505_v61 = vsel %vm58_vm2, %v3043_v38, 0  ;;  %v5510_v62 = vsub.f32 %v5458_v45, %v553_v22  ;;  %v5516_v3 = vand.u32 4294901760, %v550_v24  ;;  %v1537_v45 = vld [vmem:[#allocation2 + $0xb] sm:$0x1] }
  0x3e   :  { %4572 = vmatprep.mubr.msk.f32.mxu0 %vm5283_vm0, %v5284_v1  ;;  %v562_v4 = vand.u32 4294901760, %v45_v54  ;;  %v5525_v7 = vsub.f32 %v5472_v18, %v2551_v50  ;;  %v2554_v8 = vand.u32 4294901760, %v2539_v58  ;;  %v2557_v9 = vand.u32 4294901760, %v2540_v60 }
  0x3f   :  { %4828 = vmatpush3.bf16.msra.mxu1 %v4827_v14  ;;  %v5533_v11 = vsub.f32 %v550_v24, %v5516_v3  ;;  %v634_v12 = vand.u32 4294901760, %v5510_v62  ;;  %v5566_v31 = vpack.c.bf16 %v556_v35, %v553_v22  ;;  %v1545_v56 = vrot.slane %v1537_v45, 7 }
  0x40   :  { %4972 = vmatpush3.bf16.msra.mxu0 %v4971_v15  ;;  %4829 = vmatprep.subr.bf16.mxu1 %v5282_v0  ;;  %v5539_v14 = vsub.f32 %v45_v54, %v562_v4  ;;  %vm4031_vm3 = vcmask 254976  }
  0x41   :  { %4973 = vmatprep.subr.bf16.mxu0 %v5282_v0 }
  0x42   :  { %4309 = vmatmul.mubr.f32.vlgmr.msra.gmra.mrb[0].mxu1 %v5372_v44  ;;  %v655_v40 = vand.u32 4294901760, %v5539_v14 }
  0x43   :  { %4831 = vmatpush3.bf16.msra.mxu1 %v4830_v20  ;;  %4573 = vmatmul.mubr.f32.vlgmr.msra.gmra.mrb[0].mxu0 %v5381_v49  ;;  %v5546_v20 = vsub.f32 %v2539_v58, %v2554_v8 }
  0x44   :  { %4975 = vmatpush3.bf16.msra.mxu0 %v4974_v25  ;;  %4832 = vmatprep.subr.bf16.mxu1 %v5282_v0  ;;  %v5548_v25 = vsub.f32 %v2540_v60, %v2557_v9 }
  0x45   :  { %4976 = vmatprep.subr.bf16.mxu0 %v5282_v0  ;;  %4319 = vmatprep.mubr.msk.f32.mxu1 %vm5283_vm0, %v5284_v1  ;;  %v2643_v42 = vand.u32 4294901760, %v5546_v20 }
  0x46   :  { %4583 = vmatprep.mubr.msk.f32.mxu0 %vm5283_vm0, %v5284_v1 }
  0x47   :  { %4834 = vmatpush3.bf16.msra.mxu1 %v4833_v26 }
  0x48   :  { %4978 = vmatpush3.bf16.msra.mxu0 %v4977_v28  ;;  %4835 = vmatprep.subr.bf16.mxu1 %v5282_v0  ;;  %v2636_v28 = vand.u32 4294901760, %v5525_v7 }
  0x49   :  { %4979 = vmatprep.subr.bf16.mxu0 %v5282_v0 }
  0x4a   :  { %4320 = vmatmul.mubr.f32.vlgmr.msra.gmra.mrb[0].mxu1 %v5386_v51  ;;  %v2548_v51 = vand.u32 4294901760, %v5468_v52 }
  0x4b   :  { %4837 = vmatpush3.bf16.msra.mxu1 %v5331_v16  ;;  %4584 = vmatmul.mubr.f32.vlgmr.msra.gmra.mrb[0].mxu0 %v5393_v55  ;;  %v2545_v55 = vsel %vm58_vm2, %v2544_v32, 0  ;;  %v1536_v32 = vld [vmem:[#allocation2 + $0x3] sm:$0x1] }
  0x4c   :  { %4981 = vmatpush3.bf16.msra.mxu0 %v5339_v21  ;;  %4838 = vmatprep.subr.bf16.mxu1 %v5282_v0  ;;  %v5518_v5 = vand.u32 4294901760, %v2545_v55  ;;  %v5522_v6 = vsub.f32 %v5468_v52, %v2548_v51  ;;  %v5568_v34 = vpack.c.bf16 %v2551_v50, %v2548_v51  ;;  %v1546_v51 = vsel %vm56_vm1, %v1545_v56, %v1536_v32 }
  0x4d   :  { %4982 = vmatprep.subr.bf16.mxu0 %v5282_v0  ;;  %4330 = vmatprep.mubr.msk.f32.mxu1 %vm5283_vm0, %v5284_v1  ;;  %v5617_v27 = vsel %vm58_vm2, %v1546_v51, 0 }
  0x4e   :  { %4594 = vmatprep.mubr.msk.f32.mxu0 %vm5283_vm0, %v5284_v1  ;;  %v5542_v15 = vsub.f32 %v2545_v55, %v5518_v5  ;;  %v2629_v26 = vand.u32 4294901760, %v5522_v6 }
  0x4f   :  { %4840 = vmatpush3.bf16.msra.mxu1 %v5343_v23 }
  0x50   :  { %4984 = vmatpush3.bf16.msra.mxu0 %v5356_v36  ;;  %4841 = vmatprep.subr.bf16.mxu1 %v5282_v0  ;;  %v2618_v39 = vand.u32 4294901760, %v5542_v15  ;;  %v2630_v41 = vsub.f32 %v5522_v6, %v2629_v26 }
  0x51   :  { %4985 = vmatprep.subr.bf16.mxu0 %v5282_v0 }
  0x52   :  { %4331 = vmatmul.mubr.f32.vlgmr.msra.gmra.mrb[0].mxu1 %v132_v59  ;;  %v5490_v59 = vld [vmem:[#allocation5 + $0x10] sm:$0xff]  ;;  %v2619_v33 = vsub.f32 %v5542_v15, %v2618_v39  ;;  %v2631_v22 = vand.u32 4294901760, %v2630_v41 }
  0x53   :  { %4843 = vmatpush3.bf16.msra.mxu1 %v4842_v43  ;;  %4595 = vmatmul.mubr.f32.vlgmr.msra.gmra.mrb[0].mxu0 %v2119_v63  ;;  %v5513_v63 = vsub.f32 %v5460_v46, %v556_v35  ;;  %v559_v2 = vand.u32 4294901760, %v5490_v59  ;;  %v2650_v43 = vand.u32 4294901760, %v5548_v25  ;;  %v3533_v46 = vld [vmem:[#allocation2 + $0xf] sm:$0x1] }
  0x54   :  { %4987 = vmatpush3.bf16.msra.mxu0 %v4986_v48  ;;  %4844 = vmatprep.subr.bf16.mxu1 %v5282_v0  ;;  %v2620_v54 = vand.u32 4294901760, %v2619_v33 }
  0x55   :  { %4988 = vmatprep.subr.bf16.mxu0 %v5282_v0  ;;  %4341 = vmatprep.mubr.msk.f32.mxu1 %vm5283_vm0, %v5284_v1  ;;  %v5530_v10 = vsub.f32 %v5490_v59, %v559_v2  ;;  %v641_v13 = vand.u32 4294901760, %v5513_v63  ;;  %v5583_v48 = vpack.c.bf16 %v562_v4, %v559_v2 }
  0x56   :  { %4605 = vmatprep.mubr.msk.f32.mxu0 %vm5283_vm0, %v5284_v1 }
  0x57   :  { %4846 = vmatpush3.bf16.msra.mxu1 %v4845_v19  ;;  %v642_v29 = vsub.f32 %v5513_v63, %v641_v13  ;;  %v648_v30 = vand.u32 4294901760, %v5530_v10  ;;  %v3541_v19 = vrot.slane %v3533_v46, 7  ;;  %v4869_v41 = vpack.c.bf16 %v5539_v14, %v5530_v10  ;;  %v1040_v46 = vld [vmem:[#allocation5 + $0x40] sm:$0xff] }
  0x58   :  { %4990 = vmatpush3.bf16.msra.mxu0 %v4989_v47  ;;  %4847 = vmatprep.subr.bf16.mxu1 %v5282_v0  ;;  %v2651_v47 = vsub.f32 %v5548_v25, %v2650_v43  ;;  %v4878_v45 = vpack.c.bf16 %v641_v13, %v634_v12  ;;  %v1042_v13 = vld [vmem:[#allocation5 + $0x50] sm:$0xff] }
  0x59   :  { %4991 = vmatprep.subr.bf16.mxu0 %v5282_v0  ;;  %v643_v53 = vand.u32 4294901760, %v642_v29  ;;  %v649_v18 = vsub.f32 %v5530_v10, %v648_v30  ;;  %v3542_v50 = vsel %vm56_vm1, %v3541_v19, %v3532_v57  ;;  %v5010_v29 = vpack.c.bf16 %v5525_v7, %v5522_v6  ;;  %v3038_v10 = vld [vmem:[#allocation5 + $0xd0] sm:$0xff] }
  0x5a   :  { %4342 = vmatmul.mubr.f32.vlgmr.msra.gmra.mrb[0].mxu1 %v5372_v44  ;;  %v5622_v58 = vsel %vm58_vm2, %v3542_v50, 0  ;;  %v2652_v4 = vand.u32 4294901760, %v2651_v47 }
  0x5b   :  { %4849 = vmatpush3.bf16.msra.mxu1 %v5331_v16  ;;  %4606 = vmatmul.mubr.f32.vlgmr.msra.gmra.mrb[0].mxu0 %v5381_v49  ;;  %v623_v16 = vand.u32 4294901760, %v5533_v11  ;;  %v650_v55 = vand.u32 4294901760, %v649_v18  ;;  %v3037_v18 = vld [vmem:[#allocation5 + $0xc8] sm:$0xff] }
  0x5c   :  { %4993 = vmatpush3.bf16.msra.mxu0 %v5339_v21  ;;  %4850 = vmatprep.subr.bf16.mxu1 %v5282_v0  ;;  %v635_v21 = vsub.f32 %v5510_v62, %v634_v12  ;;  %v3050_v12 = vand.u32 4294901760, %v3037_v18 }
  0x5d   :  { %4994 = vmatprep.subr.bf16.mxu0 %v5282_v0  ;;  %4352 = vmatprep.mubr.msk.f32.mxu1 %vm5283_vm0, %v5284_v1  ;;  %v624_v52 = vsub.f32 %v5533_v11, %v623_v16 }
  0x5e   :  { %4616 = vmatprep.mubr.msk.f32.mxu0 %vm5283_vm0, %v5284_v1  ;;  %v636_v17 = vand.u32 4294901760, %v635_v21  ;;  %v4866_v21 = vpack.c.bf16 %v5513_v63, %v5510_v62  ;;  %v1051_v62 = vand.u32 4294901760, %v1040_v46  ;;  %v4881_v63 = vpack.c.bf16 %v655_v40, %v648_v30 }
  0x5f   :  { %4852 = vmatpush3.bf16.msra.mxu1 %v5343_v23  ;;  %v2637_v23 = vsub.f32 %v5525_v7, %v2636_v28  ;;  %v625_v59 = vand.u32 4294901760, %v624_v52  ;;  %v5022_v52 = vpack.c.bf16 %v2636_v28, %v2629_v26  ;;  %v5025_v7 = vpack.c.bf16 %v2650_v43, %v2643_v42  ;;  %v1043_v26 = vld [vmem:[#allocation5 + $0x58] sm:$0xff] }
  0x60   :  { %4996 = vmatpush3.bf16.msra.mxu0 %v5356_v36  ;;  %4853 = vmatprep.subr.bf16.mxu1 %v5282_v0  ;;  %v5585_v36 = vpack.c.bf16 %v2557_v9, %v2554_v8  ;;  %v4860_v24 = vpack.c.bf16 %v643_v53, %v636_v17  ;;  %v1041_v17 = vld [vmem:[#allocation5 + $0x48] sm:$0xff]  ;;  %v3036_v53 = vld [vmem:[#allocation5 + $0xc0] sm:$0xff]  ;;  %v1057_v28 = vand.u32 4294901760, %v1042_v13  ;;  %v5701_v30 = vand.u32 4294901760, %v5505_v61 }
  0x61   :  { %4997 = vmatprep.subr.bf16.mxu0 %v5282_v0  ;;  %v2638_v35 = vand.u32 4294901760, %v2637_v23  ;;  %v5013_v23 = vpack.c.bf16 %v5548_v25, %v5546_v20  ;;  %v1054_v6 = vand.u32 4294901760, %v1041_v17 }
  0x62   :  { %4353 = vmatmul.mubr.f32.vlgmr.msra.gmra.mrb[0].mxu1 %v5372_v44  ;;  %v656_v44 = vsub.f32 %v5539_v14, %v655_v40  ;;  %v3039_v14 = vld [vmem:[#allocation5 + $0xd8] sm:$0xff]  ;;  %v5706_v40 = vsub.f32 %v3037_v18, %v3050_v12  ;;  %v5724_v19 = vsub.f32 %v5505_v61, %v5701_v30 }
  0x63   :  { %4855 = vmatpush3.bf16.msra.mxu1 %v5566_v31  ;;  %4617 = vmatmul.mubr.f32.vlgmr.msra.gmra.mrb[0].mxu0 %v5381_v49  ;;  %v2644_v49 = vsub.f32 %v5546_v20, %v2643_v42  ;;  %v5004_v60 = vpack.c.bf16 %v2638_v35, %v2631_v22  ;;  %v5696_v20 = vand.u32 4294901760, %v5498_v37  ;;  %v5698_v25 = vsub.f32 %v1041_v17, %v1054_v6 }
  0x64   :  { %4999 = vmatpush3.bf16.msra.mxu0 %v5568_v34  ;;  %4856 = vmatprep.subr.bf16.mxu1 %v5282_v0  ;;  %v657_v38 = vand.u32 4294901760, %v656_v44  ;;  %v3053_v42 = vand.u32 4294901760, %v3038_v10  ;;  %v3056_v43 = vand.u32 4294901760, %v3039_v14  ;;  %v5717_v44 = vsub.f32 %v1042_v13, %v1057_v28 }
  0x65   :  { %5000 = vmatprep.subr.bf16.mxu0 %v5282_v0  ;;  %4363 = vmatprep.mubr.msk.f32.mxu1 %vm5283_vm0, %v5284_v1  ;;  %v2645_v2 = vand.u32 4294901760, %v2644_v49  ;;  %v5712_v32 = vsub.f32 %v5498_v37, %v5696_v20  ;;  %v1139_v57 = vand.u32 4294901760, %v5698_v25  ;;  %v3135_v35 = vand.u32 4294901760, %v5706_v40 }
  0x66   :  { %4627 = vmatprep.mubr.msk.f32.mxu0 %vm5283_vm0, %v5284_v1  ;;  %v4863_v8 = vpack.c.bf16 %v657_v38, %v650_v55  ;;  %v5728_v37 = vsub.f32 %v3038_v10, %v3053_v42  ;;  %v5730_v22 = vsub.f32 %v3039_v14, %v3056_v43  ;;  %v5739_v61 = vpack.c.bf16 %v1054_v6, %v1051_v62  ;;  %v1539_v14 = vld [vmem:[#allocation5 + $0x60] sm:$0xff] }
  0x67   :  { %4858 = vmatpush3.bf16.msra.mxu1 %v5583_v48  ;;  %v5007_v9 = vpack.c.bf16 %v2652_v4, %v2645_v2  ;;  %v1121_v49 = vand.u32 4294901760, %v5712_v32  ;;  %v1140_v51 = vsub.f32 %v5698_v25, %v1139_v57 }
  0x68   :  { %5002 = vmatpush3.bf16.msra.mxu0 %v5585_v36  ;;  %4859 = vmatprep.subr.bf16.mxu1 %v5282_v0  ;;  %v3142_v55 = vand.u32 4294901760, %v5728_v37  ;;  %v3149_v38 = vand.u32 4294901760, %v5730_v22 }
  0x69   :  { %5003 = vmatprep.subr.bf16.mxu0 %v5282_v0  ;;  %v1122_v2 = vsub.f32 %v5712_v32, %v1121_v49 }
  0x6a   :  { %4364 = vmatmul.mubr.f32.vlgmr.msra.gmra.mrb[0].mxu1 %v625_v59  ;;  %v3117_v59 = vand.u32 4294901760, %v5724_v19 }
  0x6b   :  { %4861 = vmatpush3.bf16.msra.mxu1 %v4860_v24  ;;  %4628 = vmatmul.mubr.f32.vlgmr.msra.gmra.mrb[0].mxu0 %v2620_v54  ;;  %v1146_v24 = vand.u32 4294901760, %v5717_v44 }
  0x6c   :  { %5005 = vmatpush3.bf16.msra.mxu0 %v5004_v60  ;;  %4862 = vmatprep.subr.bf16.mxu1 %v5282_v0 }
  0x6d   :  { %5006 = vmatprep.subr.bf16.mxu0 %v5282_v0  ;;  %4374 = vmatprep.mubr.msk.f32.mxu1 %vm5283_vm0, %v5284_v1 }
  0x6e   :  { %4638 = vmatprep.mubr.msk.f32.mxu0 %vm5283_vm0, %v5284_v1 }
  0x6f   :  { %4864 = vmatpush3.bf16.msra.mxu1 %v4863_v8  ;;  %v1141_v8 = vand.u32 4294901760, %v1140_v51 }
  0x70   :  { %5008 = vmatpush3.bf16.msra.mxu0 %v5007_v9  ;;  %4865 = vmatprep.subr.bf16.mxu1 %v5282_v0  ;;  %v3118_v9 = vsub.f32 %v5724_v19, %v3117_v59 }
  0x71   :  { %5009 = vmatprep.subr.bf16.mxu0 %v5282_v0 }
  0x72   :  { %4375 = vmatmul.mubr.f32.vlgmr.msra.gmra.mrb[0].mxu1 %v5516_v3 }
  0x73   :  { %4867 = vmatpush3.bf16.msra.mxu1 %v4866_v21  ;;  %4639 = vmatmul.mubr.f32.vlgmr.msra.gmra.mrb[0].mxu0 %v5518_v5 }
  0x74   :  { %5011 = vmatpush3.bf16.msra.mxu0 %v5010_v29  ;;  %4868 = vmatprep.subr.bf16.mxu1 %v5282_v0 }
  0x75   :  { %5012 = vmatprep.subr.bf16.mxu0 %v5282_v0  ;;  %4385 = vmatprep.mubr.msk.f32.mxu1 %vm5283_vm0, %v5284_v1 }
  0x76   :  { %4649 = vmatprep.mubr.msk.f32.mxu0 %vm5283_vm0, %v5284_v1 }
  0x77   :  { %4870 = vmatpush3.bf16.msra.mxu1 %v4869_v41 }
  0x78   :  { %5014 = vmatpush3.bf16.msra.mxu0 %v5013_v23  ;;  %4871 = vmatprep.subr.bf16.mxu1 %v5282_v0  ;;  %v3150_v23 = vsub.f32 %v5730_v22, %v3149_v38 }
  0x79   :  { %5015 = vmatprep.subr.bf16.mxu0 %v5282_v0 }
  0x7a   :  { %4386 = vmatmul.mubr.f32.vlgmr.msra.gmra.mrb[0].mxu1 %v5533_v11  ;;  %v3047_v11 = vand.u32 4294901760, %v3036_v53 }
  0x7b   :  { %4873 = vmatpush3.bf16.msra.mxu1 %v5566_v31  ;;  %4650 = vmatmul.mubr.f32.vlgmr.msra.gmra.mrb[0].mxu0 %v5542_v15  ;;  %v5693_v15 = vsub.f32 %v1040_v46, %v1051_v62 }
  0x7c   :  { %5017 = vmatpush3.bf16.msra.mxu0 %v5568_v34  ;;  %4874 = vmatprep.subr.bf16.mxu1 %v5282_v0 }
  0x7d   :  { %5018 = vmatprep.subr.bf16.mxu0 %v5282_v0  ;;  %4396 = vmatprep.mubr.msk.f32.mxu1 %vm5283_vm0, %v5284_v1  ;;  %v1132_v33 = vand.u32 4294901760, %v5693_v15 }
  0x7e   :  { %4660 = vmatprep.mubr.msk.f32.mxu0 %vm5283_vm0, %v5284_v1 }
  0x7f   :  { %4876 = vmatpush3.bf16.msra.mxu1 %v5583_v48  ;;  %v1133_v47 = vsub.f32 %v5693_v15, %v1132_v33  ;;  %v4914_v10 = vpack.c.bf16 %v1139_v57, %v1132_v33  ;;  %v1541_v57 = vld [vmem:[#allocation5 + $0x70] sm:$0xff] }
  0x80   :  { %5020 = vmatpush3.bf16.msra.mxu0 %v5585_v36  ;;  %4877 = vmatprep.subr.bf16.mxu1 %v5282_v0 }
  0x81   :  { %5021 = vmatprep.subr.bf16.mxu0 %v5282_v0  ;;  %v1134_v4 = vand.u32 4294901760, %v1133_v47  ;;  %v5875_v47 = vand.u32 4294901760, %v5622_v58 }
  0x82   :  { %4397 = vmatmul.mubr.f32.vlgmr.msra.gmra.mrb[0].mxu1 %v623_v16  ;;  %v1060_v16 = vand.u32 4294901760, %v1043_v26 }
  0x83   :  { %4879 = vmatpush3.bf16.msra.mxu1 %v4878_v45  ;;  %4661 = vmatmul.mubr.f32.vlgmr.msra.gmra.mrb[0].mxu0 %v2618_v39  ;;  %v5704_v39 = vsub.f32 %v3036_v53, %v3047_v11  ;;  %v1123_v45 = vand.u32 4294901760, %v1122_v2  ;;  %v4896_v46 = vpack.c.bf16 %v1141_v8, %v1134_v4  ;;  %v5898_v4 = vsub.f32 %v5622_v58, %v5875_v47 }
  0x84   :  { %5023 = vmatpush3.bf16.msra.mxu0 %v5022_v52  ;;  %4880 = vmatprep.subr.bf16.mxu1 %v5282_v0  ;;  %v5719_v56 = vsub.f32 %v1043_v26, %v1060_v16  ;;  %v5766_v60 = vpack.c.bf16 %v1060_v16, %v1057_v28  ;;  %v3119_v52 = vand.u32 4294901760, %v3118_v9  ;;  %v5049_v26 = vpack.c.bf16 %v5730_v22, %v5728_v37  ;;  %v1540_v16 = vld [vmem:[#allocation5 + $0x68] sm:$0xff] }
  0x85   :  { %5024 = vmatprep.subr.bf16.mxu0 %v5282_v0  ;;  %4407 = vmatprep.mubr.msk.f32.mxu1 %vm5283_vm0, %v5284_v1 }
  0x86   :  { %4671 = vmatprep.mubr.msk.f32.mxu0 %vm5283_vm0, %v5284_v1  ;;  %v1153_v50 = vand.u32 4294901760, %v5719_v56  ;;  %v4905_v13 = vpack.c.bf16 %v5719_v56, %v5717_v44 }
  0x87   :  { %4882 = vmatpush3.bf16.msra.mxu1 %v4881_v63  ;;  %v3151_v63 = vand.u32 4294901760, %v3150_v23 }
  0x88   :  { %5026 = vmatpush3.bf16.msra.mxu0 %v5025_v7  ;;  %4883 = vmatprep.subr.bf16.mxu1 %v5282_v0  ;;  %v1154_v21 = vsub.f32 %v5719_v56, %v1153_v50  ;;  %v3538_v56 = vld [vmem:[#allocation5 + $0xf8] sm:$0xff] }
  0x89   :  { %5027 = vmatprep.subr.bf16.mxu0 %v5282_v0 }
  0x8a   :  { %4408 = vmatmul.mubr.f32.vlgmr.msra.gmra.mrb[0].mxu1 %v5516_v3  ;;  %v1155_v53 = vand.u32 4294901760, %v1154_v21 }
  0x8b   :  { %4885 = vmatpush3.bf16.msra.mxu1 %v5566_v31  ;;  %4672 = vmatmul.mubr.f32.vlgmr.msra.gmra.mrb[0].mxu0 %v5518_v5  ;;  %v3128_v31 = vand.u32 4294901760, %v5704_v39 }
  0x8c   :  { %5029 = vmatpush3.bf16.msra.mxu0 %v5568_v34  ;;  %4886 = vmatprep.subr.bf16.mxu1 %v5282_v0  ;;  %v5741_v34 = vpack.c.bf16 %v3050_v12, %v3047_v11  ;;  %v4902_v11 = vpack.c.bf16 %v5698_v25, %v5693_v15  ;;  %v5046_v12 = vpack.c.bf16 %v5706_v40, %v5704_v39  ;;  %v1550_v15 = vand.u32 4294901760, %v1539_v14 }
  0x8d   :  { %5030 = vmatprep.subr.bf16.mxu0 %v5282_v0  ;;  %4418 = vmatprep.mubr.msk.f32.mxu1 %vm5283_vm0, %v5284_v1  ;;  %v3129_v54 = vsub.f32 %v5704_v39, %v3128_v31  ;;  %v5058_v28 = vpack.c.bf16 %v3135_v35, %v3128_v31  ;;  %v4917_v25 = vpack.c.bf16 %v1153_v50, %v1146_v24  ;;  %v1553_v39 = vand.u32 4294901760, %v1540_v16  ;;  %v1542_v31 = vld [vmem:[#allocation5 + $0x78] sm:$0xff] }
  0x8e   :  { %4682 = vmatprep.mubr.msk.f32.mxu0 %vm5283_vm0, %v5284_v1  ;;  %v3555_v50 = vand.u32 4294901760, %v3538_v56 }
  0x8f   :  { %4888 = vmatpush3.bf16.msra.mxu1 %v5583_v48  ;;  %v3136_v48 = vsub.f32 %v5706_v40, %v3135_v35  ;;  %v3130_v29 = vand.u32 4294901760, %v3129_v54  ;;  %v5061_v40 = vpack.c.bf16 %v3149_v38, %v3142_v55  ;;  %v5872_v22 = vsub.f32 %v1540_v16, %v1553_v39 }
  0x90   :  { %5032 = vmatpush3.bf16.msra.mxu0 %v5585_v36  ;;  %4889 = vmatprep.subr.bf16.mxu1 %v5282_v0  ;;  %v5768_v36 = vpack.c.bf16 %v3056_v43, %v3053_v42  ;;  %v3535_v42 = vld [vmem:[#allocation5 + $0xe0] sm:$0xff]  ;;  %v3536_v43 = vld [vmem:[#allocation5 + $0xe8] sm:$0xff]  ;;  %v1556_v35 = vand.u32 4294901760, %v1541_v57  ;;  %v5904_v8 = vsub.f32 %v3538_v56, %v3555_v50  ;;  %v5913_v58 = vpack.c.bf16 %v1553_v39, %v1550_v15 }
  0x91   :  { %5033 = vmatprep.subr.bf16.mxu0 %v5282_v0  ;;  %v3137_v41 = vand.u32 4294901760, %v3136_v48  ;;  %v3549_v33 = vand.u32 4294901760, %v3536_v43  ;;  %v1638_v2 = vand.u32 4294901760, %v5872_v22 }
  0x92   :  { %4419 = vmatmul.mubr.f32.vlgmr.msra.gmra.mrb[0].mxu1 %v5516_v3  ;;  %v1147_v3 = vsub.f32 %v5717_v44, %v1146_v24  ;;  %v3537_v44 = vld [vmem:[#allocation5 + $0xf0] sm:$0xff] }
  0x93   :  { %4891 = vmatpush3.bf16.msra.mxu1 %v5739_v61  ;;  %4683 = vmatmul.mubr.f32.vlgmr.msra.gmra.mrb[0].mxu0 %v5518_v5  ;;  %v3143_v5 = vsub.f32 %v5728_v37, %v3142_v55  ;;  %v5040_v18 = vpack.c.bf16 %v3137_v41, %v3130_v29  ;;  %v5870_v37 = vand.u32 4294901760, %v5617_v27  ;;  %v3552_v24 = vand.u32 4294901760, %v3537_v44 }
  0x94   :  { %5035 = vmatpush3.bf16.msra.mxu0 %v5741_v34  ;;  %4892 = vmatprep.subr.bf16.mxu1 %v5282_v0  ;;  %v1148_v17 = vand.u32 4294901760, %v1147_v3  ;;  %v5891_v55 = vsub.f32 %v1541_v57, %v1556_v35  ;;  %v1639_v29 = vsub.f32 %v5872_v22, %v1638_v2  ;;  %v3616_v41 = vand.u32 4294901760, %v5898_v4 }
  0x95   :  { %5036 = vmatprep.subr.bf16.mxu0 %v5282_v0  ;;  %4429 = vmatprep.mubr.msk.f32.mxu1 %vm5283_vm0, %v5284_v1  ;;  %v3144_v62 = vand.u32 4294901760, %v3143_v5  ;;  %v5886_v54 = vsub.f32 %v5617_v27, %v5870_v37  ;;  %v5902_v27 = vsub.f32 %v3537_v44, %v3552_v24 }
  0x96   :  { %4693 = vmatprep.mubr.msk.f32.mxu0 %vm5283_vm0, %v5284_v1  ;;  %v4899_v6 = vpack.c.bf16 %v1155_v53, %v1148_v17  ;;  %v1645_v5 = vand.u32 4294901760, %v5891_v55 }
  0x97   :  { %4894 = vmatpush3.bf16.msra.mxu1 %v5766_v60  ;;  %v5043_v7 = vpack.c.bf16 %v3151_v63, %v3144_v62  ;;  %v1620_v3 = vand.u32 4294901760, %v5886_v54  ;;  %v1640_v62 = vand.u32 4294901760, %v1639_v29  ;;  %v3617_v63 = vsub.f32 %v5898_v4, %v3616_v41 }
  0x98   :  { %5038 = vmatpush3.bf16.msra.mxu0 %v5768_v36  ;;  %4895 = vmatprep.subr.bf16.mxu1 %v5282_v0 }
  0x99   :  { %5039 = vmatprep.subr.bf16.mxu0 %v5282_v0  ;;  %v1621_v53 = vsub.f32 %v5886_v54, %v1620_v3 }
  0x9a   :  { %4430 = vmatmul.mubr.f32.vlgmr.msra.gmra.mrb[0].mxu1 %v1123_v45 }
  0x9b   :  { %4897 = vmatpush3.bf16.msra.mxu1 %v4896_v46  ;;  %4694 = vmatmul.mubr.f32.vlgmr.msra.gmra.mrb[0].mxu0 %v3119_v52  ;;  %v3641_v46 = vand.u32 4294901760, %v5902_v27  ;;  %v3648_v52 = vand.u32 4294901760, %v5904_v8 }
  0x9c   :  { %5041 = vmatpush3.bf16.msra.mxu0 %v5040_v18  ;;  %4898 = vmatprep.subr.bf16.mxu1 %v5282_v0 }
  0x9d   :  { %5042 = vmatprep.subr.bf16.mxu0 %v5282_v0  ;;  %4440 = vmatprep.mubr.msk.f32.mxu1 %vm5283_vm0, %v5284_v1  ;;  %v5097_v56 = vpack.c.bf16 %v3648_v52, %v3641_v46 }
  0x9e   :  { %4704 = vmatprep.mubr.msk.f32.mxu0 %vm5283_vm0, %v5284_v1 }
  0x9f   :  { %4900 = vmatpush3.bf16.msra.mxu1 %v4899_v6 }
  0xa0   :  { %5044 = vmatpush3.bf16.msra.mxu0 %v5043_v7  ;;  %4901 = vmatprep.subr.bf16.mxu1 %v5282_v0 }
  0xa1   :  { %5045 = vmatprep.subr.bf16.mxu0 %v5282_v0 }
  0xa2   :  { %4441 = vmatmul.mubr.f32.vlgmr.msra.gmra.mrb[0].mxu1 %v5696_v20 }
  0xa3   :  { %4903 = vmatpush3.bf16.msra.mxu1 %v4902_v11  ;;  %4705 = vmatmul.mubr.f32.vlgmr.msra.gmra.mrb[0].mxu0 %v5701_v30 }
  0xa4   :  { %5047 = vmatpush3.bf16.msra.mxu0 %v5046_v12  ;;  %4904 = vmatprep.subr.bf16.mxu1 %v5282_v0  ;;  %v3649_v12 = vsub.f32 %v5904_v8, %v3648_v52 }
  0xa5   :  { %5048 = vmatprep.subr.bf16.mxu0 %v5282_v0  ;;  %4451 = vmatprep.mubr.msk.f32.mxu1 %vm5283_vm0, %v5284_v1 }
  0xa6   :  { %4715 = vmatprep.mubr.msk.f32.mxu0 %vm5283_vm0, %v5284_v1 }
  0xa7   :  { %4906 = vmatpush3.bf16.msra.mxu1 %v4905_v13  ;;  %v1622_v13 = vand.u32 4294901760, %v1621_v53 }
  0xa8   :  { %5050 = vmatpush3.bf16.msra.mxu0 %v5049_v26  ;;  %4907 = vmatprep.subr.bf16.mxu1 %v5282_v0 }
  0xa9   :  { %5051 = vmatprep.subr.bf16.mxu0 %v5282_v0 }
  0xaa   :  { %4452 = vmatmul.mubr.f32.vlgmr.msra.gmra.mrb[0].mxu1 %v5712_v32  ;;  %v3546_v32 = vand.u32 4294901760, %v3535_v42 }
  0xab   :  { %4909 = vmatpush3.bf16.msra.mxu1 %v5739_v61  ;;  %4716 = vmatmul.mubr.f32.vlgmr.msra.gmra.mrb[0].mxu0 %v5724_v19  ;;  %v5867_v19 = vsub.f32 %v1539_v14, %v1550_v15 }
  0xac   :  { %5053 = vmatpush3.bf16.msra.mxu0 %v5741_v34  ;;  %4910 = vmatprep.subr.bf16.mxu1 %v5282_v0  ;;  %v5878_v51 = vsub.f32 %v3535_v42, %v3546_v32 }
  0xad   :  { %5054 = vmatprep.subr.bf16.mxu0 %v5282_v0  ;;  %4462 = vmatprep.mubr.msk.f32.mxu1 %vm5283_vm0, %v5284_v1  ;;  %v1631_v48 = vand.u32 4294901760, %v5867_v19  ;;  %v4938_v39 = vpack.c.bf16 %v5872_v22, %v5867_v19 }
  0xae   :  { %4726 = vmatprep.mubr.msk.f32.mxu0 %vm5283_vm0, %v5284_v1 }
  0xaf   :  { %4912 = vmatpush3.bf16.msra.mxu1 %v5766_v60  ;;  %v1632_v21 = vsub.f32 %v5867_v19, %v1631_v48  ;;  %v4950_v57 = vpack.c.bf16 %v1638_v2, %v1631_v48 }
  0xb0   :  { %5056 = vmatpush3.bf16.msra.mxu0 %v5768_v36  ;;  %4913 = vmatprep.subr.bf16.mxu1 %v5282_v0 }
  0xb1   :  { %5057 = vmatprep.subr.bf16.mxu0 %v5282_v0  ;;  %v1633_v18 = vand.u32 4294901760, %v1632_v21 }
  0xb2   :  { %4463 = vmatmul.mubr.f32.vlgmr.msra.gmra.mrb[0].mxu1 %v1121_v49  ;;  %v1559_v49 = vand.u32 4294901760, %v1542_v31 }
  0xb3   :  { %4915 = vmatpush3.bf16.msra.mxu1 %v4914_v10  ;;  %4727 = vmatmul.mubr.f32.vlgmr.msra.gmra.mrb[0].mxu0 %v3117_v59  ;;  %v5880_v59 = vsub.f32 %v3536_v43, %v3549_v33  ;;  %v4932_v26 = vpack.c.bf16 %v1640_v62, %v1633_v18  ;;  %v3618_v10 = vand.u32 4294901760, %v3617_v63  ;;  %v3650_v43 = vand.u32 4294901760, %v3649_v12 }
  0xb4   :  { %5059 = vmatpush3.bf16.msra.mxu0 %v5058_v28  ;;  %4916 = vmatprep.subr.bf16.mxu1 %v5282_v0  ;;  %v5893_v38 = vsub.f32 %v1542_v31, %v1559_v49  ;;  %v5940_v17 = vpack.c.bf16 %v1559_v49, %v1556_v35 }
  0xb5   :  { %5060 = vmatprep.subr.bf16.mxu0 %v5282_v0  ;;  %4473 = vmatprep.mubr.msk.f32.mxu1 %vm5283_vm0, %v5284_v1  ;;  %v3634_v9 = vand.u32 4294901760, %v5880_v59 }
  0xb6   :  { %4737 = vmatprep.mubr.msk.f32.mxu0 %vm5283_vm0, %v5284_v1  ;;  %v1652_v23 = vand.u32 4294901760, %v5893_v38 }
  0xb7   :  { %4918 = vmatpush3.bf16.msra.mxu1 %v4917_v25 }
  0xb8   :  { %5062 = vmatpush3.bf16.msra.mxu0 %v5061_v40  ;;  %4919 = vmatprep.subr.bf16.mxu1 %v5282_v0  ;;  %v1653_v6 = vsub.f32 %v5893_v38, %v1652_v23  ;;  %v5082_v40 = vpack.c.bf16 %v5880_v59, %v5878_v51  ;;  %v4953_v44 = vpack.c.bf16 %v1652_v23, %v1645_v5 }
  0xb9   :  { %5063 = vmatprep.subr.bf16.mxu0 %v5282_v0 }
  0xba   :  { %4474 = vmatmul.mubr.f32.vlgmr.msra.gmra.mrb[0].mxu1 %v5696_v20  ;;  %v1654_v28 = vand.u32 4294901760, %v1653_v6 }
  0xbb   :  { %4921 = vmatpush3.bf16.msra.mxu1 %v5739_v61  ;;  %4738 = vmatmul.mubr.f32.vlgmr.msra.gmra.mrb[0].mxu0 %v5701_v30  ;;  %v3627_v61 = vand.u32 4294901760, %v5878_v51 }
  0xbc   :  { %5065 = vmatpush3.bf16.msra.mxu0 %v5741_v34  ;;  %4922 = vmatprep.subr.bf16.mxu1 %v5282_v0  ;;  %v5915_v34 = vpack.c.bf16 %v3549_v33, %v3546_v32  ;;  %v4941_v32 = vpack.c.bf16 %v5893_v38, %v5891_v55  ;;  %v5085_v33 = vpack.c.bf16 %v5904_v8, %v5902_v27 }
  0xbd   :  { %5066 = vmatprep.subr.bf16.mxu0 %v5282_v0  ;;  %4484 = vmatprep.mubr.msk.f32.mxu1 %vm5283_vm0, %v5284_v1  ;;  %v3628_v45 = vsub.f32 %v5878_v51, %v3627_v61  ;;  %v5094_v31 = vpack.c.bf16 %v3634_v9, %v3627_v61 }
  0xbe   :  { %4748 = vmatprep.mubr.msk.f32.mxu0 %vm5283_vm0, %v5284_v1 }
  0xbf   :  { %4924 = vmatpush3.bf16.msra.mxu1 %v5766_v60  ;;  %v3635_v60 = vsub.f32 %v5880_v59, %v3634_v9  ;;  %v3629_v7 = vand.u32 4294901760, %v3628_v45 }
  0xc0   :  { %5068 = vmatpush3.bf16.msra.mxu0 %v5768_v36  ;;  %4925 = vmatprep.subr.bf16.mxu1 %v5282_v0  ;;  %v5942_v36 = vpack.c.bf16 %v3555_v50, %v3552_v24 }
  0xc1   :  { %5069 = vmatprep.subr.bf16.mxu0 %v5282_v0  ;;  %v3636_v11 = vand.u32 4294901760, %v3635_v60 }
  0xc2   :  { %4485 = vmatmul.mubr.f32.vlgmr.msra.gmra.mrb[0].mxu1 %v5696_v20  ;;  %v1646_v20 = vsub.f32 %v5891_v55, %v1645_v5 }
  0xc3   :  { %4927 = vmatpush3.bf16.msra.mxu1 %v5913_v58  ;;  %4749 = vmatmul.mubr.f32.vlgmr.msra.gmra.mrb[0].mxu0 %v5701_v30  ;;  %v3642_v30 = vsub.f32 %v5902_v27, %v3641_v46  ;;  %v5076_v16 = vpack.c.bf16 %v3636_v11, %v3629_v7 }
  0xc4   :  { %5071 = vmatpush3.bf16.msra.mxu0 %v5915_v34  ;;  %4928 = vmatprep.subr.bf16.mxu1 %v5282_v0  ;;  %v1647_v14 = vand.u32 4294901760, %v1646_v20 }
  0xc5   :  { %5072 = vmatprep.subr.bf16.mxu0 %v5282_v0  ;;  %4495 = vmatprep.mubr.msk.f32.mxu1 %vm5283_vm0, %v5284_v1  ;;  %v3643_v42 = vand.u32 4294901760, %v3642_v30 }
  0xc6   :  { %4759 = vmatprep.mubr.msk.f32.mxu0 %vm5283_vm0, %v5284_v1  ;;  %v4935_v15 = vpack.c.bf16 %v1654_v28, %v1647_v14 }
  0xc7   :  { %4930 = vmatpush3.bf16.msra.mxu1 %v5940_v17  ;;  %v5079_v25 = vpack.c.bf16 %v3650_v43, %v3643_v42 }
  0xc8   :  { %5074 = vmatpush3.bf16.msra.mxu0 %v5942_v36  ;;  %4931 = vmatprep.subr.bf16.mxu1 %v5282_v0 }
  0xc9   :  { %5075 = vmatprep.subr.bf16.mxu0 %v5282_v0 }
  0xca   :  { %4496 = vmatmul.mubr.f32.vlgmr.msra.gmra.mrb[0].mxu1 %v1622_v13 }
  0xcb   :  { %4933 = vmatpush3.bf16.msra.mxu1 %v4932_v26  ;;  %4760 = vmatmul.mubr.f32.vlgmr.msra.gmra.mrb[0].mxu0 %v3618_v10 }
  0xcc   :  { %5077 = vmatpush3.bf16.msra.mxu0 %v5076_v16  ;;  %4934 = vmatprep.subr.bf16.mxu1 %v5282_v0 }
  0xcd   :  { %5078 = vmatprep.subr.bf16.mxu0 %v5282_v0  ;;  %4506 = vmatprep.mubr.msk.f32.mxu1 %vm5283_vm0, %v5284_v1 }
  0xce   :  { %4770 = vmatprep.mubr.msk.f32.mxu0 %vm5283_vm0, %v5284_v1 }
  0xcf   :  { %4936 = vmatpush3.bf16.msra.mxu1 %v4935_v15 }
  0xd0   :  { %5080 = vmatpush3.bf16.msra.mxu0 %v5079_v25  ;;  %4937 = vmatprep.subr.bf16.mxu1 %v5282_v0 }
  0xd1   :  { %5081 = vmatprep.subr.bf16.mxu0 %v5282_v0 }
  0xd2   :  { %4507 = vmatmul.mubr.f32.vlgmr.msra.gmra.mrb[0].mxu1 %v5870_v37 }
  0xd3   :  { %4939 = vmatpush3.bf16.msra.mxu1 %v4938_v39  ;;  %4771 = vmatmul.mubr.f32.vlgmr.msra.gmra.mrb[0].mxu0 %v5875_v47 }
  0xd4   :  { %5083 = vmatpush3.bf16.msra.mxu0 %v5082_v40  ;;  %4940 = vmatprep.subr.bf16.mxu1 %v5282_v0 }
  0xd5   :  { %5084 = vmatprep.subr.bf16.mxu0 %v5282_v0  ;;  %4517 = vmatprep.mubr.msk.f32.mxu1 %vm5283_vm0, %v5284_v1 }
  0xd6   :  { %4781 = vmatprep.mubr.msk.f32.mxu0 %vm5283_vm0, %v5284_v1 }
  0xd7   :  { %4942 = vmatpush3.bf16.msra.mxu1 %v4941_v32 }
  0xd8   :  { %5086 = vmatpush3.bf16.msra.mxu0 %v5085_v33  ;;  %4943 = vmatprep.subr.bf16.mxu1 %v5282_v0 }
  0xd9   :  { %5087 = vmatprep.subr.bf16.mxu0 %v5282_v0 }
  0xda   :  { %4518 = vmatmul.mubr.f32.vlgmr.msra.gmra.mrb[0].mxu1 %v5886_v54 }
  0xdb   :  { %4945 = vmatpush3.bf16.msra.mxu1 %v5913_v58  ;;  %4782 = vmatmul.mubr.f32.vlgmr.msra.gmra.mrb[0].mxu0 %v5898_v4 }
  0xdc   :  { %5089 = vmatpush3.bf16.msra.mxu0 %v5915_v34  ;;  %4946 = vmatprep.subr.bf16.mxu1 %v5282_v0 }
  0xdd   :  { %5090 = vmatprep.subr.bf16.mxu0 %v5282_v0  ;;  %4528 = vmatprep.mubr.msk.f32.mxu1 %vm5283_vm0, %v5284_v1 }
  0xde   :  { %4792 = vmatprep.mubr.msk.f32.mxu0 %vm5283_vm0, %v5284_v1 }
  0xdf   :  { %4948 = vmatpush3.bf16.msra.mxu1 %v5940_v17 }
  0xe0   :  { %5092 = vmatpush3.bf16.msra.mxu0 %v5942_v36  ;;  %4949 = vmatprep.subr.bf16.mxu1 %v5282_v0 }
  0xe1   :  { %5093 = vmatprep.subr.bf16.mxu0 %v5282_v0 }
  0xe2   :  { %4529 = vmatmul.mubr.f32.vlgmr.msra.gmra.mrb[0].mxu1 %v1620_v3 }
  0xe3   :  { %4951 = vmatpush3.bf16.msra.mxu1 %v4950_v57  ;;  %4793 = vmatmul.mubr.f32.vlgmr.msra.gmra.mrb[0].mxu0 %v3616_v41 }
  0xe4   :  { %5095 = vmatpush3.bf16.msra.mxu0 %v5094_v31  ;;  %4952 = vmatprep.subr.bf16.mxu1 %v5282_v0 }
  0xe5   :  { %5096 = vmatprep.subr.bf16.mxu0 %v5282_v0  ;;  %4539 = vmatprep.mubr.msk.f32.mxu1 %vm5283_vm0, %v5284_v1 }
  0xe6   :  { %4803 = vmatprep.mubr.msk.f32.mxu0 %vm5283_vm0, %v5284_v1 }
  0xe7   :  { %4954 = vmatpush3.bf16.msra.mxu1 %v4953_v44 }
  0xe8   :  { %5098 = vmatpush3.bf16.msra.mxu0 %v5097_v56  ;;  %4955 = vmatprep.subr.bf16.mxu1 %v5282_v0 }
  0xe9   :  { %5099 = vmatprep.subr.bf16.mxu0 %v5282_v0 }
  0xea   :  { %4540 = vmatmul.mubr.f32.vlgmr.msra.gmra.mrb[0].mxu1 %v5870_v37 }
  0xeb   :  { %4957 = vmatpush3.bf16.msra.mxu1 %v5913_v58  ;;  %4804 = vmatmul.mubr.f32.vlgmr.msra.gmra.mrb[0].mxu0 %v5875_v47 }
  0xec   :  { %5101 = vmatpush3.bf16.msra.mxu0 %v5915_v34  ;;  %4958 = vmatprep.subr.bf16.mxu1 %v5282_v0 }
  0xed   :  { %5102 = vmatprep.subr.bf16.mxu0 %v5282_v0  ;;  %4550 = vmatprep.mubr.msk.f32.mxu1 %vm5283_vm0, %v5284_v1 }
  0xee   :  { %4814 = vmatprep.mubr.msk.f32.mxu0 %vm5283_vm0, %v5284_v1 }
  0xef   :  { %4960 = vmatpush3.bf16.msra.mxu1 %v5940_v17 }
  0xf0   :  { %5104 = vmatpush3.bf16.msra.mxu0 %v5942_v36 }
  0xf2   :  { %4551 = vmatmul.mubr.f32.vlgmr.msra.gmra.mrb[0].mxu1 %v5870_v37 }
  0xf3   :  { %4815 = vmatmul.mubr.f32.vlgmr.msra.gmra.mrb[0].mxu0 %v5875_v47 }
 0x1c5   :  { %v2030_v19 = vpop.f32.mrb[0].mxu1 }
 0x1c6   :  { %v4026_v22 = vpop.f32.mrb[0].mxu0  ;;  %v4552_v35 = vpop.f32.mrb[1].mxu1 }
 0x1c7   :  { %v5105_v0 = vadd.f32 %v4026_v22, %v2030_v19  ;;  %v4816_v49 = vpop.f32.mrb[1].mxu0 }
 0x1c9   :  { %4032 = vst.msk [vmem:[#allocation7] sm:$0x3] %vm4031_vm3, %v5105_v0 }
 0x1ca   :  { %5261 = shalt.err (!%p5258_p6)
}
 0x1cb   :  { %s5262_s10 = scalar_lea.hbm %s6071_s2, 32 }
 0x1cc   :  { %p5263_p7 = scmp.ne.s32.totalorder %s6071_s2, %s5262_s10  ;;  %p5266_p8 = scmp.lt.u32.totalorder %s5262_s10, %s6071_s2 }
 0x1ce   :  { %p5268_p9 = pnand %p5266_p8, %p5263_p7 }
 0x1d0   :  { %5271 = shalt.err (!%p5268_p9)
}
 0x1d1   :  { %4042 = dma.vmem_to_hbm [thread:$0]  %s4040_s6, 32, %s6071_s2, [#allocation4]  }
 0x1d2   :  { %5276 = dma.done.wait [#allocation4], 32  }
 0x1d3   :  { %5277 = vsyncadd [#allocation4], 4294967264 }
 0x1d4   :  { %4046 = vsyncpa [#allocation3], 1 }
 0x1d5   :  { %4047 = vsyncpa [#allocation6], 1 }
 0x1d6   :  { %4048 = vsyncpa [#allocation4], 1 }

</bundles_post_ra>
